<compile_context>
chip_gen: v7x
topology: tpu7x:2x2x1
jax: 0.10.0
libtpu: 0.0.40
codegen_flags: <defaults>
</compile_context>

<pallas_src>
import math

import jax
import jax.numpy as jnp
from jax import lax
from jax.experimental import pallas as pl
from jax.experimental.pallas import tpu as pltpu


def _vmem_limit_bytes() -> int:
    """Generation-aware scoped-VMEM request (~80% of per-core physical VMEM)."""
    try:
        return int(pltpu.get_tpu_info().vmem_capacity_bytes * 0.8)
    except Exception:
        return 64 * 1024 * 1024  # conservative fallback


def _pick_seq_tile(s: int, cap: int) -> int:
    """Largest power-of-two tile <= cap that divides s (>= 8), else s itself."""
    # TODO(synk): pad the sequence instead of falling back to tile == s for
    # long, oddly-sized sequences (a whole-sequence tile can exceed VMEM).
    t = min(cap, s)
    while t > 8 and s % t != 0:
        t //= 2
    return t if s % t == 0 else s


# ---------------------------------------------------------------------------
# Kernel 1: per-head QKV projection (softmax scale pre-folded into Q weights).
# ---------------------------------------------------------------------------
def _qkv_proj_kernel(x_ref, wq_ref, wk_ref, wv_ref, bq_ref, bk_ref, bv_ref,
                     q_ref, k_ref, v_ref):
    # One (seq-tile, head) step: three small GEMMs written straight to the
    # head-major q/k/v outputs (no (ts, 3E) f32 temporary, no lane slicing).
    x = x_ref[0]                                              # (ts, E) bf16

    def _proj(w_ref, b_ref, o_ref):
        y = jnp.dot(x, w_ref[0], preferred_element_type=jnp.float32) + b_ref[0]
        o_ref[0, 0] = y.astype(o_ref.dtype)

    _proj(wq_ref, bq_ref, q_ref)
    _proj(wk_ref, bk_ref, k_ref)
    _proj(wv_ref, bv_ref, v_ref)


# ---------------------------------------------------------------------------
# Kernel 2: flash-style attention (online softmax) + fused output projection.
# Grid: (batch, q_tile, head, kv_tile); head and kv are reduction axes.
# ---------------------------------------------------------------------------
def _flash_attn_kernel(q_ref, k_ref, v_ref, wout_ref, bout_ref, o_ref,
                       m_scr, l_scr, acc_scr, out_scr):
    hi = pl.program_id(2)
    ki = pl.program_id(3)
    last_h = pl.num_programs(2) - 1
    last_k = pl.num_programs(3) - 1

    @pl.when(ki == 0)
    def _init_head_state():
        m_scr[...] = jnp.full(m_scr.shape, -jnp.inf, dtype=m_scr.dtype)
        l_scr[...] = jnp.zeros_like(l_scr)
        acc_scr[...] = jnp.zeros_like(acc_scr)

    @pl.when(jnp.logical_and(hi == 0, ki == 0))
    def _init_out():
        out_scr[...] = jnp.zeros_like(out_scr)

    q = q_ref[0, 0]                           # (tq, D)  scale pre-folded in Wq
    k = k_ref[0, 0]                           # (tk, D)
    v = v_ref[0, 0]                           # (tk, D)

    # TODO(synk): optional attention mask not implemented (mask=None path only).
    # Scores: contract the last dims of both operands (no explicit k^T).
    s = lax.dot_general(q, k, (((1,), (1,)), ((), ())),
                        preferred_element_type=jnp.float32)    # (tq, tk) f32

    m_prev = m_scr[...]
    m_new = jnp.maximum(m_prev, jnp.max(s, axis=-1, keepdims=True))
    alpha = jnp.exp(m_prev - m_new)                            # (tq, 1)
    # TODO(synk): on v6e/v7x the exponent could be taken in bf16 (~2x EUP);
    # kept f32 so the same kernel is valid on v5e.
    p = jnp.exp(s - m_new)                                     # (tq, tk)

    l_scr[...] = alpha * l_scr[...] + jnp.sum(p, axis=-1, keepdims=True)
    acc_scr[...] = alpha * acc_scr[...] + jnp.dot(
        p.astype(v.dtype), v, preferred_element_type=jnp.float32)
    m_scr[...] = m_new

    @pl.when(ki == last_k)
    def _fold_head_into_output():
        # Per-head output-projection accumulation: no epilogue concatenate,
        # cheap contraction-dim (sublane) slice of Wout via its leading axis.
        inv_l = pl.reciprocal(l_scr[...], approx=True)         # EUP slot
        ctx = (acc_scr[...] * inv_l).astype(q_ref.dtype)       # (tq, D) bf16
        out_scr[...] += jnp.dot(ctx, wout_ref[0],
                                preferred_element_type=jnp.float32)

    @pl.when(jnp.logical_and(hi == last_h, ki == last_k))
    def _finalize():
        o_ref[0] = (out_scr[...] + bout_ref[...]).astype(o_ref.dtype)


# ---------------------------------------------------------------------------
# Host wrapper.
# ---------------------------------------------------------------------------
def self_attention(x, wqkv, bqkv, wout, bout, *, num_heads,
                   compute_dtype=jnp.bfloat16):
    B, S, E = x.shape
    H = num_heads
    D = E // H
    assert D * H == E, "embed_dim must be divisible by num_heads"

    vmem_limit = _vmem_limit_bytes()

    # Split Wqkv / bqkv into per-matrix pieces; fold 1/sqrt(D) into Q (host,
    # one-time) so the kernel never scales the score tensor.
    scale = 1.0 / math.sqrt(D)
    wq, wk, wv = wqkv[:, :E] * scale, wqkv[:, E:2 * E], wqkv[:, 2 * E:]
    bq, bk, bv = bqkv[:E] * scale, bqkv[E:2 * E], bqkv[2 * E:]

    def _w_head_major(w):     # (E, E) -> (H, E, D)
        return jnp.transpose(w.reshape(E, H, D), (1, 0, 2)).astype(compute_dtype)

    def _b_head_major(b):     # (E,) -> (H, 1, D), f32 for the accumulate-add
        return b.reshape(H, 1, D).astype(jnp.float32)

    wq_h, wk_h, wv_h = _w_head_major(wq), _w_head_major(wk), _w_head_major(wv)
    bq_h, bk_h, bv_h = _b_head_major(bq), _b_head_major(bk), _b_head_major(bv)
    wout_h = wout.reshape(H, D, E).astype(compute_dtype)       # per-head rows
    bout_f = bout.reshape(1, E).astype(jnp.float32)
    x_c = x.astype(compute_dtype)

    ts = _pick_seq_tile(S, 256)   # projection sequence tile
    tq = _pick_seq_tile(S, 512)   # query tile (bigger -> less K/V refetch)
    tk = _pick_seq_tile(S, 256)   # key/value tile

    # ---- Kernel 1: per-head QKV projection -> q, k, v in (B, H, S, D) ----
    # TODO(synk): for small head_dim on v6e/v7x, group heads per step so the
    # projection GEMM's N dim fills the 256-wide MXU.
    qkv_shape = jax.ShapeDtypeStruct((B, H, S, D), compute_dtype)
    q, k, v = pl.pallas_call(
        _qkv_proj_kernel,
        out_shape=(qkv_shape, qkv_shape, qkv_shape),
        grid_spec=pltpu.PrefetchScalarGridSpec(
            num_scalar_prefetch=0,
            grid=(B, S // ts, H),
            in_specs=[
                pl.BlockSpec((1, ts, E), lambda b, s, h: (b, s, 0)),   # x
                pl.BlockSpec((1, E, D), lambda b, s, h: (h, 0, 0)),    # Wq per head
                pl.BlockSpec((1, E, D), lambda b, s, h: (h, 0, 0)),    # Wk per head
                pl.BlockSpec((1, E, D), lambda b, s, h: (h, 0, 0)),    # Wv per head
                pl.BlockSpec((1, 1, D), lambda b, s, h: (h, 0, 0)),    # bq per head
                pl.BlockSpec((1, 1, D), lambda b, s, h: (h, 0, 0)),    # bk per head
                pl.BlockSpec((1, 1, D), lambda b, s, h: (h, 0, 0)),    # bv per head
            ],
            out_specs=[
                pl.BlockSpec((1, 1, ts, D), lambda b, s, h: (b, h, s, 0)),
                pl.BlockSpec((1, 1, ts, D), lambda b, s, h: (b, h, s, 0)),
                pl.BlockSpec((1, 1, ts, D), lambda b, s, h: (b, h, s, 0)),
            ],
        ),
        compiler_params=pltpu.CompilerParams(
            dimension_semantics=("parallel", "parallel", "parallel"),
            vmem_limit_bytes=vmem_limit),
    )(x_c, wq_h, wk_h, wv_h, bq_h, bk_h, bv_h)

    # ---- Kernel 2: flash attention + fused per-head output projection ----
    out = pl.pallas_call(
        _flash_attn_kernel,
        out_shape=jax.ShapeDtypeStruct((B, S, E), x.dtype),
        grid_spec=pltpu.PrefetchScalarGridSpec(
            num_scalar_prefetch=0,
            grid=(B, S // tq, H, S // tk),         # head + kv reduction axes last
            in_specs=[
                pl.BlockSpec((1, 1, tq, D), lambda b, qi, h, ki: (b, h, qi, 0)),
                pl.BlockSpec((1, 1, tk, D), lambda b, qi, h, ki: (b, h, ki, 0)),
                pl.BlockSpec((1, 1, tk, D), lambda b, qi, h, ki: (b, h, ki, 0)),
                pl.BlockSpec((1, D, E), lambda b, qi, h, ki: (h, 0, 0)),  # Wout_h
                pl.BlockSpec((1, E), lambda b, qi, h, ki: (0, 0)),        # bout
            ],
            out_specs=pl.BlockSpec((1, tq, E), lambda b, qi, h, ki: (b, qi, 0)),
            scratch_shapes=[
                pltpu.VMEM((tq, 1), jnp.float32),    # running max (per head)
                pltpu.VMEM((tq, 1), jnp.float32),    # running sum (per head)
                pltpu.VMEM((tq, D), jnp.float32),    # per-head ctx accumulator
                pltpu.VMEM((tq, E), jnp.float32),    # fused out-proj accumulator
            ],
        ),
        compiler_params=pltpu.CompilerParams(
            dimension_semantics=("parallel", "parallel", "arbitrary",
                                 "arbitrary"),
            vmem_limit_bytes=vmem_limit),
    )(q, k, v, wout_h, bout_f)
    return out


def self_attention_ref(x, wqkv, bqkv, wout, bout, *, num_heads):
    """Pure-JAX f32 reference mirroring the PyTorch forward."""
    B, S, E = x.shape
    D = E // num_heads
    qkv = x @ wqkv + bqkv                                      # (B, S, 3E)
    qkv = qkv.reshape(B, S, 3, num_heads, D)
    q, k, v = jnp.transpose(qkv, (2, 0, 3, 1, 4))              # each (B, H, S, D)
    scores = jnp.einsum('bhsd,bhtd->bhst', q, k) / math.sqrt(D)
    attn = jax.nn.softmax(scores, axis=-1)
    ctx = jnp.einsum('bhst,bhtd->bhsd', attn, v)               # (B, H, S, D)
    ctx = jnp.transpose(ctx, (0, 2, 1, 3)).reshape(B, S, E)
    return ctx @ wout + bout


if __name__ == "__main__":
    # Small shapes consistent with the module: batch=2, seq=8, embed=32, heads=4.
    B, S, E, H = 2, 8, 32, 4

    key = jax.random.PRNGKey(0)
    kx, k1, k2, k3, k4 = jax.random.split(key, 5)

    x = jax.random.normal(kx, (B, S, E), dtype=jnp.float32)

    bound = 1.0 / math.sqrt(E)
    wqkv = jax.random.uniform(k1, (E, 3 * E), jnp.float32, -bound, bound)
    bqkv = jax.random.uniform(k2, (3 * E,), jnp.float32, -bound, bound)
    wout = jax.random.uniform(k3, (E, E), jnp.float32, -bound, bound)
    bout = jax.random.uniform(k4, (E,), jnp.float32, -bound, bound)

    out = self_attention(x, wqkv, bqkv, wout, bout, num_heads=H)
    out = jax.block_until_ready(out)

    ref = self_attention_ref(x, wqkv, bqkv, wout, bout, num_heads=H)
    assert out.shape == (B, S, E)
    # bf16 MXU operands + EUP approximate reciprocal => compare at a loose
    # (but still bug-revealing) tolerance against the f32 reference.
    assert jnp.allclose(out, ref, atol=2e-2, rtol=2e-2), "mismatch vs reference"

    print("KERNEL_OK")
</pallas_src>

<mosaic_0001>
module attributes {stable_mosaic.version = 11 : i64} {
  func.func @_qkv_proj_kernel(%arg0: i32, %arg1: i32, %arg2: i32, %arg3: memref<1x8x32xbf16, #tpu.memory_space<vmem>>, %arg4: memref<1x32x8xbf16, #tpu.memory_space<vmem>>, %arg5: memref<1x32x8xbf16, #tpu.memory_space<vmem>>, %arg6: memref<1x32x8xbf16, #tpu.memory_space<vmem>>, %arg7: memref<1x1x8xf32, #tpu.memory_space<vmem>>, %arg8: memref<1x1x8xf32, #tpu.memory_space<vmem>>, %arg9: memref<1x1x8xf32, #tpu.memory_space<vmem>>, %arg10: memref<1x1x8x8xbf16, #tpu.memory_space<vmem>>, %arg11: memref<1x1x8x8xbf16, #tpu.memory_space<vmem>>, %arg12: memref<1x1x8x8xbf16, #tpu.memory_space<vmem>>) attributes {dimension_semantics = [#tpu.dimension_semantics<parallel>, #tpu.dimension_semantics<parallel>, #tpu.dimension_semantics<parallel>], iteration_bounds = array<i64: 2, 1, 4>, scalar_prefetch = 0 : i64, scratch_operands = 0 : i64, tpu.core_type = #tpu.core_type<tc>, window_params = [{transform_indices = @transform_0, window_bounds = array<i64: 1, 8, 32>}, {transform_indices = @transform_1, window_bounds = array<i64: 1, 32, 8>}, {transform_indices = @transform_2, window_bounds = array<i64: 1, 32, 8>}, {transform_indices = @transform_3, window_bounds = array<i64: 1, 32, 8>}, {transform_indices = @transform_4, window_bounds = array<i64: 1, 1, 8>}, {transform_indices = @transform_5, window_bounds = array<i64: 1, 1, 8>}, {transform_indices = @transform_6, window_bounds = array<i64: 1, 1, 8>}, {transform_indices = @transform_7, window_bounds = array<i64: 1, 1, 8, 8>}, {transform_indices = @transform_8, window_bounds = array<i64: 1, 1, 8, 8>}, {transform_indices = @transform_9, window_bounds = array<i64: 1, 1, 8, 8>}]} {
    %c0 = arith.constant 0 : index
    %c0_0 = arith.constant 0 : index
    %c0_1 = arith.constant 0 : index
    %0 = vector.load %arg3[%c0, %c0_0, %c0_1] : memref<1x8x32xbf16, #tpu.memory_space<vmem>>, vector<1x8x32xbf16>
    %1 = vector.shape_cast %0 : vector<1x8x32xbf16> to vector<8x32xbf16>
    %c0_2 = arith.constant 0 : index
    %c0_3 = arith.constant 0 : index
    %c0_4 = arith.constant 0 : index
    %2 = vector.load %arg4[%c0_2, %c0_3, %c0_4] : memref<1x32x8xbf16, #tpu.memory_space<vmem>>, vector<1x32x8xbf16>
    %3 = vector.shape_cast %2 : vector<1x32x8xbf16> to vector<32x8xbf16>
    %cst = arith.constant dense<0.000000e+00> : vector<8x8xf32>
    %4 = tpu.matmul %1, %3, %cst {dimension_numbers = #tpu.dot_dimension_numbers<[1], [0], [0], [1], [0, 0, 1, 1], [], []>} : vector<8x32xbf16>, vector<32x8xbf16>, vector<8x8xf32> -> vector<8x8xf32>
    %c0_5 = arith.constant 0 : index
    %c0_6 = arith.constant 0 : index
    %c0_7 = arith.constant 0 : index
    %5 = vector.load %arg7[%c0_5, %c0_6, %c0_7] : memref<1x1x8xf32, #tpu.memory_space<vmem>>, vector<1x1x8xf32>
    %6 = vector.shape_cast %5 : vector<1x1x8xf32> to vector<1x8xf32>
    %7 = vector.broadcast %6 : vector<1x8xf32> to vector<8x8xf32>
    %8 = arith.addf %4, %7 : vector<8x8xf32>
    %9 = arith.truncf %8 : vector<8x8xf32> to vector<8x8xbf16>
    %c0_8 = arith.constant 0 : index
    %c0_9 = arith.constant 0 : index
    %c0_10 = arith.constant 0 : index
    %c0_11 = arith.constant 0 : index
    %10 = vector.load %arg10[%c0_8, %c0_9, %c0_10, %c0_11] : memref<1x1x8x8xbf16, #tpu.memory_space<vmem>>, vector<1x1x8x8xbf16>
    %11 = vector.shape_cast %10 : vector<1x1x8x8xbf16> to vector<8x8xbf16>
    %12 = vector.shape_cast %9 : vector<8x8xbf16> to vector<1x1x8x8xbf16>
    tpu.vector_store %arg10[%c0_8, %c0_9, %c0_10, %c0_11], %12 {strides = array<i32>} : memref<1x1x8x8xbf16, #tpu.memory_space<vmem>>, vector<1x1x8x8xbf16>,
    %c0_12 = arith.constant 0 : index
    %c0_13 = arith.constant 0 : index
    %c0_14 = arith.constant 0 : index
    %13 = vector.load %arg5[%c0_12, %c0_13, %c0_14] : memref<1x32x8xbf16, #tpu.memory_space<vmem>>, vector<1x32x8xbf16>
    %14 = vector.shape_cast %13 : vector<1x32x8xbf16> to vector<32x8xbf16>
    %cst_15 = arith.constant dense<0.000000e+00> : vector<8x8xf32>
    %15 = tpu.matmul %1, %14, %cst_15 {dimension_numbers = #tpu.dot_dimension_numbers<[1], [0], [0], [1], [0, 0, 1, 1], [], []>} : vector<8x32xbf16>, vector<32x8xbf16>, vector<8x8xf32> -> vector<8x8xf32>
    %c0_16 = arith.constant 0 : index
    %c0_17 = arith.constant 0 : index
    %c0_18 = arith.constant 0 : index
    %16 = vector.load %arg8[%c0_16, %c0_17, %c0_18] : memref<1x1x8xf32, #tpu.memory_space<vmem>>, vector<1x1x8xf32>
    %17 = vector.shape_cast %16 : vector<1x1x8xf32> to vector<1x8xf32>
    %18 = vector.broadcast %17 : vector<1x8xf32> to vector<8x8xf32>
    %19 = arith.addf %15, %18 : vector<8x8xf32>
    %20 = arith.truncf %19 : vector<8x8xf32> to vector<8x8xbf16>
    %c0_19 = arith.constant 0 : index
    %c0_20 = arith.constant 0 : index
    %c0_21 = arith.constant 0 : index
    %c0_22 = arith.constant 0 : index
    %21 = vector.load %arg11[%c0_19, %c0_20, %c0_21, %c0_22] : memref<1x1x8x8xbf16, #tpu.memory_space<vmem>>, vector<1x1x8x8xbf16>
    %22 = vector.shape_cast %21 : vector<1x1x8x8xbf16> to vector<8x8xbf16>
    %23 = vector.shape_cast %20 : vector<8x8xbf16> to vector<1x1x8x8xbf16>
    tpu.vector_store %arg11[%c0_19, %c0_20, %c0_21, %c0_22], %23 {strides = array<i32>} : memref<1x1x8x8xbf16, #tpu.memory_space<vmem>>, vector<1x1x8x8xbf16>,
    %c0_23 = arith.constant 0 : index
    %c0_24 = arith.constant 0 : index
    %c0_25 = arith.constant 0 : index
    %24 = vector.load %arg6[%c0_23, %c0_24, %c0_25] : memref<1x32x8xbf16, #tpu.memory_space<vmem>>, vector<1x32x8xbf16>
    %25 = vector.shape_cast %24 : vector<1x32x8xbf16> to vector<32x8xbf16>
    %cst_26 = arith.constant dense<0.000000e+00> : vector<8x8xf32>
    %26 = tpu.matmul %1, %25, %cst_26 {dimension_numbers = #tpu.dot_dimension_numbers<[1], [0], [0], [1], [0, 0, 1, 1], [], []>} : vector<8x32xbf16>, vector<32x8xbf16>, vector<8x8xf32> -> vector<8x8xf32>
    %c0_27 = arith.constant 0 : index
    %c0_28 = arith.constant 0 : index
    %c0_29 = arith.constant 0 : index
    %27 = vector.load %arg9[%c0_27, %c0_28, %c0_29] : memref<1x1x8xf32, #tpu.memory_space<vmem>>, vector<1x1x8xf32>
    %28 = vector.shape_cast %27 : vector<1x1x8xf32> to vector<1x8xf32>
    %29 = vector.broadcast %28 : vector<1x8xf32> to vector<8x8xf32>
    %30 = arith.addf %26, %29 : vector<8x8xf32>
    %31 = arith.truncf %30 : vector<8x8xf32> to vector<8x8xbf16>
    %c0_30 = arith.constant 0 : index
    %c0_31 = arith.constant 0 : index
    %c0_32 = arith.constant 0 : index
    %c0_33 = arith.constant 0 : index
    %32 = vector.load %arg12[%c0_30, %c0_31, %c0_32, %c0_33] : memref<1x1x8x8xbf16, #tpu.memory_space<vmem>>, vector<1x1x8x8xbf16>
    %33 = vector.shape_cast %32 : vector<1x1x8x8xbf16> to vector<8x8xbf16>
    %34 = vector.shape_cast %31 : vector<8x8xbf16> to vector<1x1x8x8xbf16>
    tpu.vector_store %arg12[%c0_30, %c0_31, %c0_32, %c0_33], %34 {strides = array<i32>} : memref<1x1x8x8xbf16, #tpu.memory_space<vmem>>, vector<1x1x8x8xbf16>,
    return
  }
  func.func @transform_0(%arg0: i32, %arg1: i32, %arg2: i32) -> (i32, i32, i32) {
    %c0_i32 = arith.constant 0 : i32
    %c0_i32_0 = arith.constant 0 : i32
    return %arg0, %arg1, %c0_i32 : i32, i32, i32
  }
  func.func @transform_1(%arg0: i32, %arg1: i32, %arg2: i32) -> (i32, i32, i32) {
    %c0_i32 = arith.constant 0 : i32
    %c0_i32_0 = arith.constant 0 : i32
    %c0_i32_1 = arith.constant 0 : i32
    return %arg2, %c0_i32, %c0_i32_0 : i32, i32, i32
  }
  func.func @transform_2(%arg0: i32, %arg1: i32, %arg2: i32) -> (i32, i32, i32) {
    %c0_i32 = arith.constant 0 : i32
    %c0_i32_0 = arith.constant 0 : i32
    %c0_i32_1 = arith.constant 0 : i32
    return %arg2, %c0_i32, %c0_i32_0 : i32, i32, i32
  }
  func.func @transform_3(%arg0: i32, %arg1: i32, %arg2: i32) -> (i32, i32, i32) {
    %c0_i32 = arith.constant 0 : i32
    %c0_i32_0 = arith.constant 0 : i32
    %c0_i32_1 = arith.constant 0 : i32
    return %arg2, %c0_i32, %c0_i32_0 : i32, i32, i32
  }
  func.func @transform_4(%arg0: i32, %arg1: i32, %arg2: i32) -> (i32, i32, i32) {
    %c0_i32 = arith.constant 0 : i32
    %c0_i32_0 = arith.constant 0 : i32
    %c0_i32_1 = arith.constant 0 : i32
    return %arg2, %c0_i32, %c0_i32_0 : i32, i32, i32
  }
  func.func @transform_5(%arg0: i32, %arg1: i32, %arg2: i32) -> (i32, i32, i32) {
    %c0_i32 = arith.constant 0 : i32
    %c0_i32_0 = arith.constant 0 : i32
    %c0_i32_1 = arith.constant 0 : i32
    return %arg2, %c0_i32, %c0_i32_0 : i32, i32, i32
  }
  func.func @transform_6(%arg0: i32, %arg1: i32, %arg2: i32) -> (i32, i32, i32) {
    %c0_i32 = arith.constant 0 : i32
    %c0_i32_0 = arith.constant 0 : i32
    %c0_i32_1 = arith.constant 0 : i32
    return %arg2, %c0_i32, %c0_i32_0 : i32, i32, i32
  }
  func.func @transform_7(%arg0: i32, %arg1: i32, %arg2: i32) -> (i32, i32, i32, i32) {
    %c0_i32 = arith.constant 0 : i32
    %c0_i32_0 = arith.constant 0 : i32
    return %arg0, %arg2, %arg1, %c0_i32 : i32, i32, i32, i32
  }
  func.func @transform_8(%arg0: i32, %arg1: i32, %arg2: i32) -> (i32, i32, i32, i32) {
    %c0_i32 = arith.constant 0 : i32
    %c0_i32_0 = arith.constant 0 : i32
    return %arg0, %arg2, %arg1, %c0_i32 : i32, i32, i32, i32
  }
  func.func @transform_9(%arg0: i32, %arg1: i32, %arg2: i32) -> (i32, i32, i32, i32) {
    %c0_i32 = arith.constant 0 : i32
    %c0_i32_0 = arith.constant 0 : i32
    return %arg0, %arg2, %arg1, %c0_i32 : i32, i32, i32, i32
  }
}

</mosaic_0001>

<bundles_post_ra>
// kernel: tpu_custom_call.1
= control target key start
LH: loop header
LB: loop body
LE: loop exit
PB: predicated region body
PF: predicated region fallthrough
CT: control target
= control target key end

     0   :  { %s2521_s0 = inlined_call_operand.hbm [shape: bf16[2,8,32], index: 0, kind: input, shape index: {}]   ;;  %s2522_s1 = inlined_call_operand.hbm [shape: bf16[4,32,8], index: 1, kind: input, shape index: {}]   ;;  %s2523_s2 = inlined_call_operand.hbm [shape: bf16[4,32,8], index: 2, kind: input, shape index: {}]   ;;  %s2524_s3 = inlined_call_operand.hbm [shape: bf16[4,32,8], index: 3, kind: input, shape index: {}]   ;;  %s2525_s4 = inlined_call_operand.hbm [shape: f32[4,1,8], index: 4, kind: input, shape index: {}]   ;;  %s2526_s5 = inlined_call_operand.hbm [shape: f32[4,1,8], index: 5, kind: input, shape index: {}]   ;;  %s2527_s6 = inlined_call_operand.hbm [shape: f32[4,1,8], index: 6, kind: input, shape index: {}]   ;;  %s2528_s7 = inlined_call_operand.hbm [shape: bf16[2,4,8,8], index: 7, kind: output, shape index: {0}]   ;;  %s2529_s8 = inlined_call_operand.hbm [shape: bf16[2,4,8,8], index: 8, kind: output, shape index: {1}]   ;;  %s2530_s9 = inlined_call_operand.hbm [shape: bf16[2,4,8,8], index: 9, kind: output, shape index: {2}]  }
   0x1   :  { %2565 = sst [smem:[#allocation42_spill]] %s2521_s0 }
   0x2   :  { %2566 = sst [smem:[#allocation43_spill]] %s2522_s1 }
   0x3   :  { %2567 = sst [smem:[#allocation44_spill]] %s2523_s2 }
   0x4   :  { %2568 = sst [smem:[#allocation45_spill]] %s2524_s3 }
   0x5   :  { %2569 = sst [smem:[#allocation46_spill]] %s2525_s4 }
   0x6   :  { %2570 = sst [smem:[#allocation47_spill]] %s2526_s5 }
   0x7   :  { %2571 = sst [smem:[#allocation48_spill]] %s2527_s6 }
   0x8   :  { %2572 = sst [smem:[#allocation49_spill]] %s2528_s7 }
   0x9   :  { %2573 = sst [smem:[#allocation50_spill]] %s2529_s8 }
   0xa   :  { %2574 = sst [smem:[#allocation51_spill]] %s2530_s9 }
   0xb   :  { %15 = vsyncpa [#allocation3], 0 }
   0xc   :  { %17 = vsyncpa [#allocation3 + $0x1], 0 }
   0xd   :  { %18 = vsyncpa [#allocation6], 0 }
   0xe   :  { %20 = vsyncpa [#allocation6 + $0x1], 0 }
   0xf   :  { %21 = vsyncpa [#allocation9], 0 }
  0x10   :  { %23 = vsyncpa [#allocation9 + $0x1], 0 }
  0x11   :  { %24 = vsyncpa [#allocation12], 0 }
  0x12   :  { %26 = vsyncpa [#allocation12 + $0x1], 0 }
  0x13   :  { %27 = vsyncpa [#allocation4], 0 }
  0x14   :  { %29 = vsyncpa [#allocation4 + $0x1], 0 }
  0x15   :  { %30 = vsyncpa [#allocation16], 0 }
  0x16   :  { %32 = vsyncpa [#allocation16 + $0x1], 0  ;;  %s1904_s30 = smov 0   ;;  %s1906_s10 = smov 0  }
  0x17   :  { %s1908_s11 = smov 0   ;;  %s1910_s12 = smov 0  }
  0x18   :  { %s1912_s13 = smov 0   ;;  %s1914_s14 = smov 0  }
  0x19   :  { %s1916_s15 = smov 0   ;;  %s1918_s16 = smov 0  }
  0x1a   :  { %s1920_s17 = smov 0   ;;  %s1922_s18 = smov 0  }
  0x1b   :  { %s1924_s19 = smov 0   ;;  %s1926_s20 = smov 0  }
  0x1c   :  { %s1928_s21 = smov 0   ;;  %s1930_s22 = smov 0  }
  0x1d LB: > { %2575 = sst [smem:[#allocation24_spill]] %s1786_s30  ;;  %p2538_p0 = scmp.eq.s32.totalorder %s1838_s22, 0  ;;  %s1838_s22 = sphi %s1930_s22, %s38_s22   ;;  %s1834_s21 = sphi %s1928_s21, %s2656_s21   ;;  %s1830_s20 = sphi %s1926_s20, %s2664_s20   ;;  %s1826_s19 = sphi %s1924_s19, %s2654_s19   ;;  %s1822_s18 = sphi %s1922_s18, %s2653_s18   ;;  %s1818_s17 = sphi %s1920_s17, %s2652_s17   ;;  %s1814_s16 = sphi %s1918_s16, %s2663_s16   ;;  %s1810_s15 = sphi %s1916_s15, %s2662_s15   ;;  %s1806_s14 = sphi %s1914_s14, %s2650_s14   ;;  %s1802_s13 = sphi %s1912_s13, %s2661_s13   ;;  %s1798_s12 = sphi %s1910_s12, %s2648_s12   ;;  %s1794_s11 = sphi %s1908_s11, %s2660_s11   ;;  %s1790_s10 = sphi %s1906_s10, %s2659_s10   ;;  %s1786_s30 = sphi %s1904_s30, %s2658_s30  }
  0x1e   : > { %2576 = sst [smem:[#allocation25_spill]] %s1794_s11  ;;  %p99_p1 = scmp.ne.s32.totalorder %s1806_s14, %s1802_s13 }
  0x1f   : > { %2577 = sst [smem:[#allocation26_spill]] %s1802_s13  ;;  %p2537_p2 = scmp.lt.s32.totalorder %s1838_s22, 8 }
  0x20   : > { %2578 = sst [smem:[#allocation27_spill]] %s1806_s14  ;;  %p101_p3 = por %p99_p1, %p2538_p0 }
  0x21   : > { %2579 = sst [smem:[#allocation28_spill]] %s1818_s17  ;;  %s1981_s23 = sand.u32 1, %s1838_s22  }
  0x22   : > { %2580 = sst [smem:[#allocation29_spill]] %s1822_s18  ;;  %s1984_s24 = sand.u32 1, %s1806_s14  }
  0x23   : > { %2581 = sst [smem:[#allocation30_spill]] %s1826_s19  ;;  %s1987_s25 = sshll.u32 %s1984_s24, 4 }
  0x24   : > { %2582 = sst [smem:[#allocation31_spill]] %s1830_s20  ;;  %s1990_s26 = sshll.u32 %s1830_s20, 8 }
  0x25   : > { %2583 = sst [smem:[#allocation32_spill]] %s1834_s21  ;;  %s2585_s1 = sld [smem:[#allocation43_spill]] }
  0x26   : > { %2584 = sst [smem:[#allocation33_spill]] %s1987_s25  ;;  %s372_s9 = scalar_lea.vmem [#allocation5], %s1987_s25 }
  0x27   : > { %s379_s8 = sshll.u32 %s372_s9, 4  ;;  %p2001_p4 = pnand %p2537_p2, %p101_p3  ;;  %s2005_s8 = int_to_ptr.vmem [resolvable:$true] %s379_s8 }
  0x29   : > { %s2586_s7 = scalar_select %p2001_p4, 1, 0 }
  0x2a   : > { %p2012_p6 = pneg %p2001_p4 }
  0x2b   : > { %s1996_s29 = scalar_lea.hbm %s2585_s1, %s1990_s26  ;;  %s1415_s6 = scalar_lea.hbm %s2585_s1, 1024 }
  0x2c   : > { %s1410_s19 = scalar_lea.hbm %s1996_s29, 256  ;;  %p1416_p9 = scmp.lt.u32.totalorder %s1996_s29, %s2585_s1 }
  0x2d   : > { %p1411_p5 = scmp.ne.s32.totalorder %s1996_s29, %s1410_s19  ;;  %p1417_p10 = scmp.lt.u32.totalorder %s1415_s6, %s1410_s19 }
  0x2e   : > { %p1419_p12 = scmp.lt.u32.totalorder %s1410_s19, %s1996_s29 }
  0x2f   : > { %p1413_p7 = pnand %p2012_p6, %p1411_p5  ;;  %p1418_p11 = por %p1417_p10, %p1416_p9 }
  0x31   : > { %p1414_p8 = pneg %p1413_p7  ;;  %p1420_p13 = por %p1419_p12, %p1418_p11 }
  0x33   : > { %p1421_p1 = pnand %p1420_p13, %p1414_p8 }
  0x35   : > { %1424 = shalt.err (!%p1421_p1)
}
  0x36   : > { %s1425_s18 = scalar_lea.vmem %s2005_s8, 256  ;;  %s1840_s9 = smov [#allocation5]  }
  0x37   : > { %p1426_p3 = scmp.ne.s32.totalorder %s2005_s8, %s1425_s18  ;;  %s1430_s28 = sshll.u32 %s1840_s9, 4  ;;  %s1431_s28 = int_to_ptr.vmem [resolvable:$false] %s1430_s28 }
  0x38   : > { %s1432_s2 = scalar_lea.vmem %s1431_s28, 512  ;;  %p1433_p2 = scmp.lt.s32.totalorder %s2005_s8, %s1431_s28 }
  0x39   : > { %p1428_p5 = pnand %p1426_p3, %p2012_p6  ;;  %p1434_p0 = scmp.lt.s32.totalorder %s1432_s2, %s1425_s18 }
  0x3b   : > { %p1429_p7 = pneg %p1428_p5  ;;  %p1435_p9 = por %p1434_p0, %p1433_p2 }
  0x3d   : > { %p1436_p10 = pnand %p1435_p9, %p1429_p7 }
  0x3f   : > { %1439 = shalt.err (!%p1436_p10)
}
  0x40   : > { %s2540_s4 = smov 64   ;;  %s2542_s6 = smov 4  }
  0x41   : > { %s2588_s18 = scalar_lea.sflag [#allocation6], %s1981_s23  ;;  %p1167_p0 = scmp.ge.s32.totalorder %s1838_s22, 1 }
  0x42   : > { %1260 = dma.hbm_to_vmem [thread:$0]  (!%p2001_p4), %s1996_s29, 256, %s2005_s8, %s2588_s18, %s2540_s4, %s2540_s4, %s2542_s6  }
  0x43   : > { %p480_p2 = scmp.lt.s32.totalorder %s1838_s22, 9  ;;  %s2591_s3 = sld [smem:[#allocation45_spill]] }
  0x44   : > { %s414_s1 = scalar_lea.vmem [#allocation8], %s1987_s25  ;;  %s2054_s30 = sshll.u32 %s1830_s20, 4 }
  0x45   : > { %p2042_p8 = pnand %p1167_p0, %p480_p2  ;;  %s421_s0 = sshll.u32 %s414_s1, 4  ;;  %s2056_s0 = int_to_ptr.vmem [resolvable:$true] %s421_s0 }
  0x46   : > { %s2546_s8 = scalar_lea.sflag [#allocation9], %s1981_s23 }
  0x47   : > { %s2589_s19 = scalar_select %p2042_p8, 1, 0 }
  0x49   : > { %2590 = sst [smem:[#allocation34_spill]] %s2589_s19  ;;  %s2050_s2 = scalar_lea.hbm %s2591_s3, %s1990_s26 }
  0x4a   : > { %s1440_s29 = scalar_lea.hbm %s2050_s2, 256  ;;  %s1445_s28 = scalar_lea.hbm %s2591_s3, 1024 }
  0x4b   : > { %p1441_p11 = scmp.ne.s32.totalorder %s2050_s2, %s1440_s29  ;;  %p1446_p1 = scmp.lt.u32.totalorder %s2050_s2, %s2591_s3 }
  0x4c   : > { %p1447_p3 = scmp.lt.u32.totalorder %s1445_s28, %s1440_s29  ;;  %p1449_p7 = scmp.lt.u32.totalorder %s1440_s29, %s2050_s2 }
  0x4d   : > { %p1443_p12 = pnand %p1441_p11, %p2012_p6 }
  0x4e   : > { %p1448_p5 = por %p1447_p3, %p1446_p1 }
  0x4f   : > { %p1444_p13 = pneg %p1443_p12 }
  0x50   : > { %p1450_p9 = por %p1449_p7, %p1448_p5 }
  0x52   : > { %p1451_p10 = pnand %p1450_p9, %p1444_p13 }
  0x54   : > { %1454 = shalt.err (!%p1451_p10)
}
  0x55   : > { %s1455_s1 = scalar_lea.vmem %s2056_s0, 256  ;;  %s1843_s18 = smov [#allocation8]  }
  0x56   : > { %p1456_p0 = scmp.ne.s32.totalorder %s2056_s0, %s1455_s1  ;;  %s1460_s9 = sshll.u32 %s1843_s18, 4  ;;  %s1461_s9 = int_to_ptr.vmem [resolvable:$false] %s1460_s9 }
  0x57   : > { %s1462_s4 = scalar_lea.vmem %s1461_s9, 512  ;;  %p1463_p12 = scmp.lt.s32.totalorder %s2056_s0, %s1461_s9 }
  0x58   : > { %p1458_p2 = pnand %p1456_p0, %p2012_p6  ;;  %p1464_p8 = scmp.lt.s32.totalorder %s1462_s4, %s1455_s1 }
  0x5a   : > { %p1459_p11 = pneg %p1458_p2  ;;  %p1465_p1 = por %p1464_p8, %p1463_p12 }
  0x5c   : > { %p1466_p3 = pnand %p1465_p1, %p1459_p11 }
  0x5e   : > { %1469 = shalt.err (!%p1466_p3)
}
  0x5f   : > { %s2592_s6 = smov 4   ;;  %s2593_s29 = smov 64  }
  0x60   : > { %1266 = dma.hbm_to_vmem [thread:$0]  (!%p2001_p4), %s2050_s2, 256, %s2056_s0, %s2546_s8, %s2593_s29, %s2593_s29, %s2592_s6  }
  0x61   : > { %s2594_s5 = sld [smem:[#allocation47_spill]]  ;;  %s451_s9 = scalar_lea.vmem [#allocation11], %s1984_s24 }
  0x62   : > { %s458_s4 = sshll.u32 %s451_s9, 4  ;;  %s459_s4 = int_to_ptr.vmem [resolvable:$true] %s458_s4 }
  0x67   : > { %s2089_s1 = scalar_lea.hbm %s2594_s5, %s2054_s30  ;;  %s1475_s2 = scalar_lea.hbm %s2594_s5, 64 }
  0x68   : > { %s1470_s19 = scalar_lea.hbm %s2089_s1, 16  ;;  %p1476_p7 = scmp.lt.u32.totalorder %s2089_s1, %s2594_s5 }
  0x69   : > { %p1471_p8 = scmp.ne.s32.totalorder %s2089_s1, %s1470_s19  ;;  %p1477_p9 = scmp.lt.u32.totalorder %s1475_s2, %s1470_s19 }
  0x6a   : > { %p1479_p0 = scmp.lt.u32.totalorder %s1470_s19, %s2089_s1 }
  0x6b   : > { %p1473_p13 = pnand %p1471_p8, %p2012_p6  ;;  %p1478_p10 = por %p1477_p9, %p1476_p7 }
  0x6d   : > { %p1474_p5 = pneg %p1473_p13  ;;  %p1480_p2 = por %p1479_p0, %p1478_p10 }
  0x6f   : > { %p1481_p11 = pnand %p1480_p2, %p1474_p5 }
  0x71   : > { %1484 = shalt.err (!%p1481_p11)
}
  0x72   : > { %s1485_s9 = scalar_lea.vmem %s459_s4, 16  ;;  %s1844_s8 = smov [#allocation11]  }
  0x73   : > { %p1486_p12 = scmp.ne.s32.totalorder %s459_s4, %s1485_s9  ;;  %s1490_s3 = sshll.u32 %s1844_s8, 4  ;;  %s1491_s3 = int_to_ptr.vmem [resolvable:$false] %s1490_s3 }
  0x74   : > { %s1492_s25 = scalar_lea.vmem %s1491_s3, 32  ;;  %p1493_p8 = scmp.lt.s32.totalorder %s459_s4, %s1491_s3 }
  0x75   : > { %p1488_p1 = pnand %p1486_p12, %p2012_p6  ;;  %p1494_p13 = scmp.lt.s32.totalorder %s1492_s25, %s1485_s9 }
  0x77   : > { %p1489_p3 = pneg %p1488_p1  ;;  %p1495_p4 = por %p1494_p13, %p1493_p8 }
  0x79   : > { %p1496_p7 = pnand %p1495_p4, %p1489_p3 }
  0x7b   : > { %1499 = shalt.err (!%p1496_p7)
}
  0x7c   : > { %p2595_p9 = scmp.ne.s32.totalorder %s2586_s7, 0  ;;  %s2596_s19 = scalar_lea.sflag [#allocation12], %s1981_s23 }
  0x7d   : > { %s2113_s3 = sadd.s32 4294967295, %s1838_s22   ;;  %s50_s0 = sadd.s32 1, %s1830_s20 }
  0x7e   : > { %1272 = dma.hbm_to_vmem [thread:$0]  (!%p2595_p9), %s2089_s1, 16, %s459_s4, %s2596_s19  }
  0x7f   : > { %s57_s2 = sadd.s32 1, %s1834_s21  ;;  %p51_p4 = scmp.ge.s32.totalorder %s50_s0, 4 }
  0x80   : > { %s66_s28 = sadd.s32 1, %s1818_s17  ;;  %p73_p5 = scmp.ne.s32.totalorder %s1818_s17, %s1814_s16 }
  0x81   : > { %p79_p10 = scmp.ne.s32.totalorder %s1814_s16, %s1810_s15  ;;  %s2666_s0 = smov (%p51_p4, %s50_s0), 0 }
  0x82   : > { %2597 = sst [smem:[#allocation35_spill]] %s2666_s0  ;;  %s2668_s2 = smov (!%p51_p4, %s57_s2), %s1834_s21 }
  0x83   : > { %p2598_p0 = scmp.eq.s32.totalorder %s1838_s22, 0  ;;  %p80_p11 = scmp.eq.s32.totalorder %s2113_s3, 0 }
  0x84   : > { %p59_p12 = scmp.ge.s32.totalorder %s2668_s2, 2  ;;  %s89_s4 = ssub.s32 %s1830_s20, %s2666_s0 }
  0x85   : > { %p2128_p2 = por %p2598_p0, %p73_p5  ;;  %s2600_s18 = sld [smem:[#allocation24_spill]] }
  0x86   : > { %p2135_p1 = por %p80_p11, %p79_p10  ;;  %p90_p3 = scmp.eq.s32.totalorder %s89_s4, 0 }
  0x87   : > { %s2670_s2 = smov (%p59_p12, %s2668_s2), 0  ;;  %s92_s9 = sadd.s32 1, %s1806_s14 }
  0x88   : > { %s2601_s15 = scalar_select %p2135_p1, 1, 0 }
  0x89   : > { %2602 = sst [smem:[#allocation36_spill]] %s2670_s2  ;;  %p105_p8 = scmp.ne.s32.totalorder %s1802_s13, %s1798_s12 }
  0x8a   : > { %s61_s25 = ssub.s32 %s1834_s21, %s2670_s2  ;;  %s252_s19 = sadd.s32 1, %s1794_s11 }
  0x8b   : > { %p64_p13 = scmp.eq.s32.totalorder %s61_s25, 0  ;;  %p2147_p7 = por %p105_p8, %p80_p11 }
  0x8c   : > { %s2152_s5 = scalar_select %p90_p3, %s1806_s14, %s92_s9  }
  0x8d   : > { %s2603_s8 = scalar_select %p2147_p7, 1, 0 }
  0x8e   : > { %2605 = sst [smem:[#allocation38_spill]] %s2152_s5  ;;  %s247_s20 = sor.u32 %s89_s4, %s61_s25 }
  0x8f   : > { %2604 = sst [smem:[#allocation37_spill]] %s2603_s8  ;;  %p262_p4 = scmp.ne.s32.totalorder %s1794_s11, %s1790_s10 }
  0x90   : > { %s2155_s0 = scalar_select %p64_p13, %s1818_s17, %s66_s28  }
  0x91   : > { %p250_p5 = scmp.eq.s32.totalorder %s247_s20, 0  ;;  %p263_p10 = scmp.eq.s32.totalorder %s2113_s3, 7 }
  0x92   : > { %2606 = sst [smem:[#allocation39_spill]] %s2155_s0  ;;  %p268_p0 = scmp.ne.s32.totalorder %s1790_s10, %s2600_s18 }
  0x93   : > { %s2607_s12 = sadd.s32 4294967294, %s1838_s22   ;;  %p2167_p11 = por %p263_p10, %p262_p4 }
  0x94   : > { %p269_p12 = scmp.eq.s32.totalorder %s2607_s12, 7  ;;  %s349_s28 = sand.u32 1, %s1818_s17  }
  0x95   : > { %s2165_s2 = scalar_select %p250_p5, %s1794_s11, %s252_s19  }
  0x96   : > { %s2609_s13 = scalar_select %p2167_p11, 1, 0 }
  0x97   : > { %2608 = sst [smem:[#allocation40_spill]] %s2165_s2  ;;  %p2171_p3 = por %p269_p12, %p268_p0 }
  0x98   : > { %s1154_s0 = sshll.u32 %s1834_s21, 6  ;;  %s1153_s4 = sshll.u32 %s349_s28, 2 }
  0x99   : > { %s2610_s9 = scalar_select %p2171_p3, 1, 0 }
  0x9a   : > { %s2612_s20 = sld [smem:[#allocation42_spill]]  ;;  %s353_s18 = scalar_lea.vmem [#allocation2], %s1153_s4 }
  0x9b   : > { %2611 = sst [smem:[#allocation41_spill]] %s2610_s9  ;;  %s361_s19 = sshll.u32 %s353_s18, 4  ;;  %s2190_s19 = int_to_ptr.vmem [resolvable:$true] %s361_s19 }
  0x9c   : > { %p2614_p8 = scmp.lt.s32.totalorder %s1838_s22, 8 }
  0x9e   : > { %p2186_p13 = pnand %p2614_p8, %p2128_p2 }
  0xa0   : > { %s2613_s8 = smov %s2612_s20  ;;  %s2180_s14 = scalar_lea.hbm %s2612_s20, %s1154_s0 }
  0xa1   : > { %s2616_s0 = sld [smem:[#allocation44_spill]]  ;;  %s350_s20 = scalar_lea.sflag [#allocation3], %s349_s28 }
  0xa2   : > { %s1500_s17 = scalar_lea.hbm %s2180_s14, 64  ;;  %p1502_p5 = pneg %p2186_p13 }
  0xa3   : > { %p1501_p4 = scmp.ne.s32.totalorder %s2180_s14, %s1500_s17  ;;  %s1505_s18 = scalar_lea.hbm %s2613_s8, 128 }
  0xa4   : > { %p1506_p0 = scmp.lt.u32.totalorder %s2180_s14, %s2613_s8  ;;  %p1507_p12 = scmp.lt.u32.totalorder %s1505_s18, %s1500_s17 }
  0xa5   : > { %p1503_p2 = pnand %p1502_p5, %p1501_p4  ;;  %p1509_p3 = scmp.lt.u32.totalorder %s1500_s17, %s2180_s14 }
  0xa6   : > { %p1508_p8 = por %p1507_p12, %p1506_p0 }
  0xa7   : > { %s2196_s25 = scalar_lea.hbm %s2616_s0, %s1990_s26  ;;  %p1504_p10 = pneg %p1503_p2 }
  0xa8   : > { %p1510_p11 = por %p1509_p3, %p1508_p8 }
  0xaa   : > { %p1511_p7 = pnand %p1510_p11, %p1504_p10 }
  0xac   : > { %1514 = shalt.err (!%p1511_p7)
}
  0xad   : > { %s1515_s21 = scalar_lea.vmem %s2190_s19, 64  ;;  %s1845_s26 = smov [#allocation2]  }
  0xae   : > { %p1516_p4 = scmp.ne.s32.totalorder %s2190_s19, %s1515_s21  ;;  %s1520_s28 = sshll.u32 %s1845_s26, 4  ;;  %s1521_s28 = int_to_ptr.vmem [resolvable:$false] %s1520_s28 }
  0xaf   : > { %s1522_s11 = scalar_lea.vmem %s1521_s28, 128  ;;  %p1523_p9 = scmp.lt.s32.totalorder %s2190_s19, %s1521_s28 }
  0xb0   : > { %p1518_p2 = pnand %p1516_p4, %p1502_p5  ;;  %p1524_p0 = scmp.lt.s32.totalorder %s1522_s11, %s1515_s21 }
  0xb2   : > { %p1519_p1 = pneg %p1518_p2  ;;  %p1525_p12 = por %p1524_p0, %p1523_p9 }
  0xb4   : > { %p1526_p3 = pnand %p1525_p12, %p1519_p1 }
  0xb6   : > { %1529 = shalt.err (!%p1526_p3)
}
  0xb7   : > { %s2617_s17 = sld [smem:[#allocation33_spill]]  ;;  %s2618_s18 = sld [smem:[#allocation46_spill]] }
  0xb8   : > { %1257 = dma.hbm_to_vmem [thread:$0]  (!%p2186_p13), %s2180_s14, 64, %s2190_s19, %s350_s20  }
  0xb9   : > { %s1530_s12 = scalar_lea.hbm %s2196_s25, 256  ;;  %s1535_s8 = scalar_lea.hbm %s2616_s0, 1024 }
  0xba   : > { %p1531_p9 = scmp.ne.s32.totalorder %s2196_s25, %s1530_s12  ;;  %p1536_p11 = scmp.lt.u32.totalorder %s2196_s25, %s2616_s0 }
  0xbb   : > { %p1537_p13 = scmp.lt.u32.totalorder %s1535_s8, %s1530_s12  ;;  %p1539_p10 = scmp.lt.u32.totalorder %s1530_s12, %s2196_s25 }
  0xbc   : > { %p1533_p1 = pnand %p1531_p9, %p2012_p6 }
  0xbd   : > { %s393_s2 = scalar_lea.vmem [#allocation7], %s2617_s17  ;;  %s2619_s26 = smov %s2618_s18 }
  0xbe   : > { %s400_s5 = sshll.u32 %s393_s2, 4  ;;  %s2230_s21 = scalar_lea.hbm %s2618_s18, %s2054_s30  ;;  %s2224_s5 = int_to_ptr.vmem [resolvable:$true] %s400_s5 }
  0xbf   : > { %p1534_p7 = pneg %p1533_p1  ;;  %p1538_p5 = por %p1537_p13, %p1536_p11 }
  0xc1   : > { %p1540_p8 = por %p1539_p10, %p1538_p5 }
  0xc3   : > { %p1541_p4 = pnand %p1540_p8, %p1534_p7 }
  0xc5   : > { %1544 = shalt.err (!%p1541_p4)
}
  0xc6   : > { %s1545_s19 = scalar_lea.vmem %s2224_s5, 256  ;;  %s1846_s20 = smov [#allocation7]  }
  0xc7   : > { %p1546_p2 = scmp.ne.s32.totalorder %s2224_s5, %s1545_s19  ;;  %s1550_s17 = sshll.u32 %s1846_s20, 4  ;;  %s1551_s17 = int_to_ptr.vmem [resolvable:$false] %s1550_s17 }
  0xc8   : > { %s1552_s9 = scalar_lea.vmem %s1551_s17, 512  ;;  %p1553_p3 = scmp.lt.s32.totalorder %s2224_s5, %s1551_s17 }
  0xc9   : > { %p1548_p0 = pnand %p1546_p2, %p2012_p6  ;;  %p1554_p9 = scmp.lt.s32.totalorder %s1552_s9, %s1545_s19 }
  0xcb   : > { %p1549_p12 = pneg %p1548_p0  ;;  %p1555_p1 = por %p1554_p9, %p1553_p3 }
  0xcd   : > { %p1556_p11 = pnand %p1555_p1, %p1549_p12 }
  0xcf   : > { %1559 = shalt.err (!%p1556_p11)
}
  0xd0   : > { %p2620_p7 = scmp.ne.s32.totalorder %s2586_s7, 0  ;;  %s2621_s8 = scalar_lea.sflag [#allocation6], %s1981_s23 }
  0xd1   : > { %s434_s2 = scalar_lea.vmem [#allocation10], %s1984_s24  ;;  %s2622_s12 = sld [smem:[#allocation48_spill]] }
  0xd2   : > { %1263 = dma.hbm_to_vmem [thread:$0]  (!%p2620_p7), %s2196_s25, 256, %s2224_s5, %s2621_s8, %s2593_s29, %s2593_s29, %s2592_s6  }
  0xd3   : > { %s441_s1 = sshll.u32 %s434_s2, 4  ;;  %s1560_s14 = scalar_lea.hbm %s2230_s21, 16  ;;  %s442_s1 = int_to_ptr.vmem [resolvable:$true] %s441_s1 }
  0xd4   : > { %p1561_p13 = scmp.ne.s32.totalorder %s2230_s21, %s1560_s14  ;;  %s1565_s17 = scalar_lea.hbm %s2619_s26, 64 }
  0xd5   : > { %p1566_p8 = scmp.lt.u32.totalorder %s2230_s21, %s2619_s26  ;;  %p1567_p4 = scmp.lt.u32.totalorder %s1565_s17, %s1560_s14 }
  0xd6   : > { %p1563_p5 = pnand %p1561_p13, %p2012_p6  ;;  %p1569_p0 = scmp.lt.u32.totalorder %s1560_s14, %s2230_s21 }
  0xd7   : > { %s2623_s28 = smov %s2622_s12  ;;  %s2263_s11 = scalar_lea.hbm %s2622_s12, %s2054_s30 }
  0xd8   : > { %p1564_p10 = pneg %p1563_p5  ;;  %p1568_p2 = por %p1567_p4, %p1566_p8 }
  0xda   : > { %p1570_p12 = por %p1569_p0, %p1568_p2 }
  0xdc   : > { %p1571_p3 = pnand %p1570_p12, %p1564_p10 }
  0xde   : > { %1574 = shalt.err (!%p1571_p3)
}
  0xdf   : > { %s1575_s30 = scalar_lea.vmem %s442_s1, 16  ;;  %s1847_s6 = smov [#allocation10]  }
  0xe0   : > { %p1576_p9 = scmp.ne.s32.totalorder %s442_s1, %s1575_s30  ;;  %s1580_s29 = sshll.u32 %s1847_s6, 4  ;;  %s1581_s29 = int_to_ptr.vmem [resolvable:$false] %s1580_s29 }
  0xe1   : > { %s1582_s25 = scalar_lea.vmem %s1581_s29, 32  ;;  %p1583_p13 = scmp.lt.s32.totalorder %s442_s1, %s1581_s29 }
  0xe2   : > { %p1578_p1 = pnand %p1576_p9, %p2012_p6  ;;  %p1584_p5 = scmp.lt.s32.totalorder %s1582_s25, %s1575_s30 }
  0xe4   : > { %p1579_p11 = pneg %p1578_p1  ;;  %p1585_p7 = por %p1584_p5, %p1583_p13 }
  0xe6   : > { %p1586_p4 = pnand %p1585_p7, %p1579_p11 }
  0xe8   : > { %1589 = shalt.err (!%p1586_p4)
}
  0xe9   : > { %p2624_p8 = scmp.ne.s32.totalorder %s2586_s7, 0  ;;  %s2625_s0 = scalar_lea.sflag [#allocation9], %s1981_s23 }
  0xea   : > { %s468_s5 = scalar_lea.vmem [#allocation13], %s1984_s24  ;;  %s1590_s2 = scalar_lea.hbm %s2263_s11, 16 }
  0xeb   : > { %1269 = dma.hbm_to_vmem [thread:$0]  (!%p2624_p8), %s2230_s21, 16, %s442_s1, %s2625_s0  }
  0xec   : > { %s475_s8 = sshll.u32 %s468_s5, 4  ;;  %p1591_p10 = scmp.ne.s32.totalorder %s2263_s11, %s1590_s2  ;;  %s476_s8 = int_to_ptr.vmem [resolvable:$true] %s475_s8 }
  0xed   : > { %s1595_s12 = scalar_lea.hbm %s2623_s28, 64  ;;  %p1596_p0 = scmp.lt.u32.totalorder %s2263_s11, %s2623_s28 }
  0xee   : > { %p1593_p7 = pnand %p1591_p10, %p2012_p6  ;;  %p1597_p12 = scmp.lt.u32.totalorder %s1595_s12, %s1590_s2 }
  0xef   : > { %p1599_p9 = scmp.lt.u32.totalorder %s1590_s2, %s2263_s11 }
  0xf0   : > { %p1594_p2 = pneg %p1593_p7  ;;  %p1598_p3 = por %p1597_p12, %p1596_p0 }
  0xf2   : > { %p1600_p1 = por %p1599_p9, %p1598_p3 }
  0xf4   : > { %p1601_p11 = pnand %p1600_p1, %p1594_p2 }
  0xf6   : > { %1604 = shalt.err (!%p1601_p11)
}
  0xf7   : > { %s1605_s24 = scalar_lea.vmem %s476_s8, 16  ;;  %s1848_s21 = smov [#allocation13]  }
  0xf8   : > { %p1606_p13 = scmp.ne.s32.totalorder %s476_s8, %s1605_s24  ;;  %s1610_s1 = sshll.u32 %s1848_s21, 4  ;;  %s1611_s1 = int_to_ptr.vmem [resolvable:$false] %s1610_s1 }
  0xf9   : > { %s1612_s20 = scalar_lea.vmem %s1611_s1, 32  ;;  %p1613_p10 = scmp.lt.s32.totalorder %s476_s8, %s1611_s1 }
  0xfa   : > { %p1608_p5 = pnand %p1606_p13, %p2012_p6  ;;  %p1614_p7 = scmp.lt.s32.totalorder %s1612_s20, %s1605_s24 }
  0xfc   : > { %p1609_p4 = pneg %p1608_p5  ;;  %p1615_p8 = por %p1614_p7, %p1613_p10 }
  0xfe   : > { %p1616_p0 = pnand %p1615_p8, %p1609_p4 }
 0x100   : > { %1619 = shalt.err (!%p1616_p0)
}
 0x101   : > { %p2626_p12 = scmp.ne.s32.totalorder %s2586_s7, 0  ;;  %s2627_s17 = scalar_lea.sflag [#allocation12], %s1981_s23 }
 0x102   : > { %s2628_s9 = sld [smem:[#allocation34_spill]] }
 0x103   : > { %1275 = dma.hbm_to_vmem [thread:$0]  (!%p2626_p12), %s2263_s11, 16, %s476_s8, %s2627_s17  }
 0x108   : > { %p2629_p2 = scmp.ne.s32.totalorder %s2628_s9, 0 }
 0x109   : > { %s486_s27 = sand.u32 (!%p2629_p2), 1, %s1814_s16   ;;  %p2630_p6 = scmp.ne.s32.totalorder (!%p2629_p2), %s2601_s15, 0 }
 0x10a   : > { %484 = sbr.rel (%p2629_p2) target bundleno = 578 (0x242), region = 48  ;;  %s2307_s30 = sshll.u32 (!%p2629_p2), %s486_s27, 2 }
 0x10b   : > { %s487_s6 = scalar_lea.sflag (!%p2629_p2), [#allocation3], %s486_s27  ;;  %s490_s29 = scalar_lea.vmem (!%p2629_p2), [#allocation2], %s2307_s30 }
 0x111   : > { %1761 = dma.done.wait (%p2630_p6), %s487_s6, 64  }
 0x112   : > { %1763 = vsyncadd (%p2630_p6), %s487_s6, 4294967232  ;;  %s2631_s7 = sld [smem:[#allocation26_spill]]  ;;  %s2632_s23 = sld [smem:[#allocation37_spill]] }
 0x113   : > { %s2315_s11 = sand.u32 1, %s2113_s3  }
 0x114   : > { %s496_s5 = scalar_lea.sflag [#allocation6], %s2315_s11 }
 0x118   : > { %s2318_s25 = sand.u32 1, %s2631_s7   ;;  %p2633_p8 = scmp.ne.s32.totalorder %s2632_s23, 0 }
 0x119   : > { %s2321_s0 = sshll.u32 %s2318_s25, 4 }
 0x11a   : > { %s499_s8 = scalar_lea.vmem [#allocation5], %s2321_s0 }
 0x11b   : > { %1765 = dma.done.wait (%p2633_p8), %s496_s5, 512  }
 0x11c   : > { %1767 = vsyncadd (%p2633_p8), %s496_s5, 4294966784  ;;  %s508_s3 = scalar_lea.vmem [#allocation7], %s2321_s0  ;;  %s514_s15 = scalar_lea.sflag [#allocation9], %s2315_s11 }
 0x11d   : > { %s517_s2 = scalar_lea.vmem [#allocation8], %s2321_s0 }
 0x11e   : > { %1769 = dma.done.wait (%p2633_p8), %s514_s15, 272  }
 0x11f   : > { %1771 = vsyncadd (%p2633_p8), %s514_s15, 4294967024  ;;  %s525_s4 = scalar_lea.vmem [#allocation10], %s2318_s25  ;;  %s531_s18 = scalar_lea.sflag [#allocation12], %s2315_s11 }
 0x120   : > { %s533_s12 = scalar_lea.vmem [#allocation11], %s2318_s25 }
 0x121   : > { %1773 = dma.done.wait (%p2633_p8), %s531_s18, 32  }
 0x122   : > { %1775 = vsyncadd (%p2633_p8), %s531_s18, 4294967264  ;;  %v1849_v0 = vmov 0.0   ;;  %vm1850_vm0 = vmmov 0   ;;  %v1404_v1 = vld [vmem:[%s499_s8] sm:$0xff]   ;;  %v1405_v2 = vld [vmem:[%s499_s8 + $0x8] sm:$0xff]   ;;  %s2634_s14 = sld [smem:[#allocation30_spill]] }
 0x123   : > { %1210 = vmatprep.subr.bf16.mxu0 %v1849_v0  ;;  %1218 = vmatprep.subr.bf16.mxu1 %v1849_v0  ;;  %v1406_v3 = vld [vmem:[%s508_s3] sm:$0xff]   ;;  %v1408_v4 = vld [vmem:[%s508_s3 + $0x8] sm:$0xff]   ;;  %s2635_s19 = sld [smem:[#allocation29_spill]]  ;;  %vm638_vm1 = vcmask 261120   ;;  %s596_s24 = sand.u32 1, %s1790_s10   ;;  %vm683_vm2 = vcmask 60416  }
 0x124   : > { %1214 = vmatprep.mubr.msk.bf16.mxu0 %vm1850_vm0, %v1849_v0  ;;  %1222 = vmatprep.mubr.msk.bf16.mxu1 %vm1850_vm0, %v1849_v0  ;;  %v614_v5 = vld [vmem:[%s490_s29] sm:$0xf]  ;;  %v1407_v6 = vld [vmem:[%s517_s2] sm:$0xff]   ;;  %s2352_s1 = sshll.u32 %s596_s24, 2  ;;  %s2636_s23 = sld [smem:[#allocation49_spill]] }
 0x125   : > { %1211 = vmatpush3.bf16.msra.mxu0 %v1404_v1  ;;  %1219 = vmatpush3.bf16.msra.mxu1 %v1406_v3  ;;  %v1409_v7 = vld [vmem:[%s517_s2 + $0x8] sm:$0xff]   ;;  %s598_s9 = scalar_lea.vmem [#allocation14], %s2352_s1  ;;  %s605_s30 = scalar_lea.vmem [#allocation15], %s2352_s1 }
 0x126   : > { %1212 = vmatprep.subr.bf16.mxu0 %v1849_v0  ;;  %1220 = vmatprep.subr.bf16.mxu1 %v1849_v0  ;;  %v1175_v8 = vld [vmem:[%s525_s4] ss:$0 sm:$0xff]  ;;  %s842_s27 = sshll.u32 %s598_s9, 4  ;;  %s858_s6 = sshll.u32 %s605_s30, 4  ;;  %s2371_s27 = int_to_ptr.vmem [resolvable:$true] %s842_s27  ;;  %s2379_s6 = int_to_ptr.vmem [resolvable:$true] %s858_s6 }
 0x127   : > { %v1179_v10 = vld [vmem:[%s533_s12] ss:$0 sm:$0xff]  ;;  %s2637_s3 = sld [smem:[#allocation50_spill]]  ;;  %s541_s2 = scalar_lea.vmem [#allocation13], %s2318_s25 }
 0x128   : > { %s1190_s21 = sshll.u32 %s2634_s14, 2  ;;  %v1183_v22 = vld [vmem:[%s541_s2] ss:$0 sm:$0xff]  ;;  %s816_s4 = scalar_lea.sflag [#allocation4], %s596_s24 }
 0x129   : > { %1213 = vmatpush3.bf16.msra.mxu0 %v1405_v2  ;;  %1221 = vmatpush3.bf16.msra.mxu1 %v1408_v4  ;;  %s838_s20 = sadd.s32 %s2635_s19, %s1190_s21  ;;  %s1620_s18 = scalar_lea.vmem %s2371_s27, 64 }
 0x12a   : > { %1226 = vmatprep.subr.bf16.mxu0 %v1849_v0  ;;  %s2359_s17 = sshll.u32 %s838_s20, 6  ;;  %p1621_p3 = scmp.ne.s32.totalorder %s2371_s27, %s1620_s18 }
 0x12b   : > { %s2369_s0 = scalar_lea.hbm %s2636_s23, %s2359_s17  ;;  %p2638_p9 = scmp.ne.s32.totalorder %s2609_s13, 0 }
 0x12c   : > { %1215 = vmatmul.mubr.msk.bf16.vlgmr.msra.gmra.mrb[0].mxu0 %vm638_vm1, %v614_v5  ;;  %1223 = vmatmul.mubr.msk.bf16.vlgmr.msra.gmra.mrb[0].mxu1 %vm638_vm1, %v614_v5  ;;  %s1851_s12 = smov [#allocation14]  }
 0x12d   : > { %1227 = vmatpush3.bf16.msra.mxu0 %v1407_v6  ;;  %1230 = vmatprep.mubr.msk.bf16.mxu0 %vm1850_vm0, %v1849_v0  ;;  %s2377_s15 = scalar_lea.hbm %s2637_s3, %s2359_s17  ;;  %p1622_p1 = pnand %p1621_p3, %p2638_p9 }
 0x12e   : > { %1228 = vmatprep.subr.bf16.mxu0 %v1849_v0  ;;  %s1624_s14 = sshll.u32 %s1851_s12, 4  ;;  %s1625_s14 = int_to_ptr.vmem [resolvable:$false] %s1624_s14 }
 0x12f   : > { %p1623_p11 = pneg %p1622_p1  ;;  %s1626_s19 = scalar_lea.vmem %s1625_s14, 128 }
 0x130   : > { %p1627_p13 = scmp.lt.s32.totalorder %s2371_s27, %s1625_s14  ;;  %p1628_p5 = scmp.lt.s32.totalorder %s1626_s19, %s1620_s18 }
 0x131   : > { %1229 = vmatpush3.bf16.msra.mxu0 %v1409_v7 }
 0x132   : > { %p1629_p4 = por %p1628_p5, %p1627_p13 }
 0x134   : > { %1231 = vmatmul.mubr.msk.bf16.vlgmr.msra.gmra.mrb[4].mxu0 %vm638_vm1, %v614_v5  ;;  %p1630_p10 = pnand %p1629_p4, %p1623_p11 }
 0x1ff   : > { %v676_v9 = vpop.f32.mrb[0].mxu0  ;;  %v742_v14 = vpop.f32.mrb[0].mxu1 }
 0x200   : > { %v677_v11 = vadd.f32 %v1175_v8, %v676_v9  ;;  %v1216_v12 = vpop.f32.mrb[1].mxu0  ;;  %v743_v17 = vadd.f32 %v1179_v10, %v742_v14  ;;  %v1224_v18 = vpop.f32.mrb[1].mxu1 }
 0x201   : > { %v679_v13 = vpop.f32.mrb[2].mxu0  ;;  %v745_v19 = vpop.f32.mrb[2].mxu1 }
 0x202   : > { %v682_v15 = vpack.c.bf16 %v677_v11, %v677_v11  ;;  %v1217_v16 = vpop.f32.mrb[3].mxu0  ;;  %v748_v20 = vpack.c.bf16 %v743_v17, %v743_v17  ;;  %v1225_v21 = vpop.f32.mrb[3].mxu1 }
 0x204   : > { %684 = vst.msk [vmem:[%s598_s9] sm:$0xf] %vm683_vm2, %v682_v15 }
 0x205   : > { %1633 = shalt.err (!%p1630_p10)
}
 0x206   : > { %s1634_s25 = scalar_lea.hbm %s2369_s0, 64  ;;  %s1638_s20 = scalar_lea.hbm %s2636_s23, 512 }
 0x207   : > { %p1635_p7 = scmp.ne.s32.totalorder %s2369_s0, %s1634_s25  ;;  %p1639_p2 = scmp.lt.u32.totalorder %s2369_s0, %s2636_s23 }
 0x208   : > { %p1640_p6 = scmp.lt.u32.totalorder %s1638_s20, %s1634_s25  ;;  %p1642_p3 = scmp.lt.u32.totalorder %s1634_s25, %s2369_s0 }
 0x209   : > { %p1636_p0 = pnand %p1635_p7, %p2638_p9 }
 0x20a   : > { %p1641_p8 = por %p1640_p6, %p1639_p2 }
 0x20b   : > { %p1637_p12 = pneg %p1636_p0 }
 0x20c   : > { %p1643_p1 = por %p1642_p3, %p1641_p8 }
 0x20e   : > { %p1644_p11 = pnand %p1643_p1, %p1637_p12 }
 0x210   : > { %1647 = shalt.err (!%p1644_p11)
}
 0x211   : > { %1248 = dma.vmem_to_hbm [thread:$0]  (%p2638_p9), %s2371_s27, 64, %s2369_s0, %s816_s4   ;;  %749 = vst.msk [vmem:[%s605_s30] sm:$0xf] %vm683_vm2, %v748_v20  ;;  %v807_v23 = vpop.f32.mrb[4].mxu0 }
 0x212   : > { %s612_s7 = scalar_lea.vmem [#allocation17], %s2352_s1  ;;  %s821_s8 = scalar_lea.sflag [#allocation16], %s2315_s11 }
 0x213   : > { %s2412_s5 = sshll.u32 %s612_s7, 4  ;;  %s1648_s2 = scalar_lea.vmem %s2379_s6, 64  ;;  %s875_s5 = int_to_ptr.vmem [resolvable:$true] %s2412_s5 }
 0x214   : > { %p1649_p13 = scmp.ne.s32.totalorder %s2379_s6, %s1648_s2  ;;  %s1852_s18 = smov [#allocation15]  }
 0x215   : > { %s1652_s12 = sshll.u32 %s1852_s18, 4  ;;  %s1653_s12 = int_to_ptr.vmem [resolvable:$false] %s1652_s12 }
 0x216   : > { %p1650_p5 = pnand %p1649_p13, %p2638_p9  ;;  %s1654_s14 = scalar_lea.vmem %s1653_s12, 128 }
 0x217   : > { %p1655_p10 = scmp.lt.s32.totalorder %s2379_s6, %s1653_s12  ;;  %p1656_p7 = scmp.lt.s32.totalorder %s1654_s14, %s1648_s2 }
 0x218   : > { %p1651_p4 = pneg %p1650_p5 }
 0x219   : > { %p1657_p0 = por %p1656_p7, %p1655_p10 }
 0x21b   : > { %p1658_p12 = pnand %p1657_p0, %p1651_p4 }
 0x21d   : > { %1661 = shalt.err (!%p1658_p12)
}
 0x21e   : > { %s1662_s27 = scalar_lea.hbm %s2377_s15, 64  ;;  %s1666_s4 = scalar_lea.hbm %s2637_s3, 512 }
 0x21f   : > { %p1663_p2 = scmp.ne.s32.totalorder %s2377_s15, %s1662_s27  ;;  %p1667_p3 = scmp.lt.u32.totalorder %s2377_s15, %s2637_s3 }
 0x220   : > { %p1668_p1 = scmp.lt.u32.totalorder %s1666_s4, %s1662_s27  ;;  %p1670_p13 = scmp.lt.u32.totalorder %s1662_s27, %s2377_s15 }
 0x221   : > { %p1664_p6 = pnand %p1663_p2, %p2638_p9 }
 0x222   : > { %p1669_p11 = por %p1668_p1, %p1667_p3 }
 0x223   : > { %p1665_p8 = pneg %p1664_p6 }
 0x224   : > { %p1671_p5 = por %p1670_p13, %p1669_p11 }
 0x226   : > { %p1672_p4 = pnand %p1671_p5, %p1665_p8 }
 0x228   : > { %1675 = shalt.err (!%p1672_p4)
}
 0x229   : > { %1249 = dma.vmem_to_hbm [thread:$0]  (%p2638_p9), %s2379_s6, 64, %s2377_s15, %s821_s8   ;;  %v808_v24 = vadd.f32 %v1183_v22, %v807_v23  ;;  %v1232_v25 = vpop.f32.mrb[5].mxu0 }
 0x22a   : > { %v810_v26 = vpop.f32.mrb[6].mxu0  ;;  %s2639_s20 = sld [smem:[#allocation51_spill]]  ;;  %s1676_s2 = scalar_lea.vmem %s875_s5, 64 }
 0x22b   : > { %v813_v27 = vpack.c.bf16 %v808_v24, %v808_v24  ;;  %v1233_v28 = vpop.f32.mrb[7].mxu0  ;;  %p1677_p10 = scmp.ne.s32.totalorder %s875_s5, %s1676_s2  ;;  %s1853_s6 = smov [#allocation17]  }
 0x22c   : > { %s1680_s15 = sshll.u32 %s1853_s6, 4  ;;  %s1681_s15 = int_to_ptr.vmem [resolvable:$false] %s1680_s15 }
 0x22d   : > { %814 = vst.msk [vmem:[%s612_s7] sm:$0xf] %vm683_vm2, %v813_v27  ;;  %p1678_p7 = pnand %p1677_p10, %p2638_p9  ;;  %s1682_s18 = scalar_lea.vmem %s1681_s15, 128 }
 0x22e   : > { %p1683_p12 = scmp.lt.s32.totalorder %s875_s5, %s1681_s15  ;;  %p1684_p2 = scmp.lt.s32.totalorder %s1682_s18, %s1676_s2 }
 0x22f   : > { %p1679_p0 = pneg %p1678_p7 }
 0x230   : > { %s2640_s9 = smov %s2639_s20  ;;  %s2442_s29 = scalar_lea.hbm %s2639_s20, %s2359_s17 }
 0x231   : > { %p1685_p6 = por %p1684_p2, %p1683_p12 }
 0x233   : > { %p1686_p8 = pnand %p1685_p6, %p1679_p0 }
 0x235   : > { %1689 = shalt.err (!%p1686_p8)
}
 0x236   : > { %s1690_s1 = scalar_lea.hbm %s2442_s29, 64  ;;  %s1694_s12 = scalar_lea.hbm %s2640_s9, 512 }
 0x237   : > { %p1691_p3 = scmp.ne.s32.totalorder %s2442_s29, %s1690_s1  ;;  %p1695_p13 = scmp.lt.u32.totalorder %s2442_s29, %s2640_s9 }
 0x238   : > { %p1696_p5 = scmp.lt.u32.totalorder %s1694_s12, %s1690_s1  ;;  %p1698_p10 = scmp.lt.u32.totalorder %s1690_s1, %s2442_s29 }
 0x239   : > { %p1692_p1 = pnand %p1691_p3, %p2638_p9 }
 0x23a   : > { %p1697_p4 = por %p1696_p5, %p1695_p13 }
 0x23b   : > { %p1693_p11 = pneg %p1692_p1 }
 0x23c   : > { %p1699_p7 = por %p1698_p10, %p1697_p4 }
 0x23e   : > { %p1700_p0 = pnand %p1699_p7, %p1693_p11 }
 0x240   : > { %1703 = shalt.err (!%p1700_p0)
}
 0x241   : > { %1250 = dma.vmem_to_hbm [thread:$0]  (%p2638_p9), %s875_s5, 64, %s2442_s29, %s821_s8  }
 0x242 PF: > { %s2641_s30 = sld [smem:[#allocation24_spill]]  ;;  %s2642_s0 = sld [smem:[#allocation41_spill]] }
 0x243   : > { %p1287_p12 = scmp.ge.s32.totalorder %s1838_s22, 2 }
 0x248   : > { %s886_s4 = sand.u32 1, %s2641_s30   ;;  %p2643_p2 = scmp.ne.s32.totalorder %s2642_s0, 0 }
 0x249   : > { %s887_s19 = scalar_lea.sflag [#allocation4], %s886_s4 }
 0x24a   : > { %p1277_p6 = pnand %p1287_p12, %p2643_p2 }
 0x24c   : > { %1777 = dma.done.wait (!%p1277_p6), %s887_s19, 64  }
 0x24d   : > { %1779 = vsyncadd (!%p1277_p6), %s887_s19, 4294967232  ;;  %s2644_s25 = sadd.s32 4294967294, %s1838_s22  }
 0x24e   : > { %s895_s24 = sand.u32 1, %s2644_s25  }
 0x24f   : > { %s896_s21 = scalar_lea.sflag [#allocation16], %s895_s24 }
 0x250   : > { %1781 = dma.done.wait (!%p1277_p6), %s896_s21, 128  }
 0x251   : > { %1783 = vsyncadd (!%p1277_p6), %s896_s21, 4294967168  ;;  %s38_s22 = sadd.s32 1, %s1838_s22   ;;  %s2646_s11 = sld [smem:[#allocation25_spill]] }
 0x252   : > { %p2474_p9 = scmp.ge.s32.totalorder %s38_s22, 10   ;;  %s2647_s5 = sld [smem:[#allocation40_spill]] }
 0x253   : > { %s2648_s12 = sld [smem:[#allocation26_spill]]  ;;  %s2649_s8 = sld [smem:[#allocation27_spill]] }
 0x254   : > { %s2650_s14 = sld [smem:[#allocation38_spill]]  ;;  %s2651_s20 = sld [smem:[#allocation28_spill]] }
 0x255   : > { %s2652_s17 = sld [smem:[#allocation39_spill]]  ;;  %s2653_s18 = sld [smem:[#allocation31_spill]] }
 0x256   : > { %s2654_s19 = sld [smem:[#allocation32_spill]]  ;;  %s2655_s29 = sld [smem:[#allocation35_spill]] }
 0x257   : > { %s2656_s21 = sld [smem:[#allocation36_spill]]  ;;  %s2658_s30 = smov %s1790_s10 }
 0x258   : > { %s2659_s10 = smov %s2646_s11  ;;  %s2660_s11 = smov %s2647_s5 }
 0x259   : > { %s2661_s13 = smov %s2649_s8  ;;  %s2662_s15 = smov %s1814_s16 }
 0x25a   : > { %s2663_s16 = smov %s2651_s20  ;;  %37 = sbr.rel (!%p2474_p9) target bundleno = 29 (0x1d), region = 197 }
 0x25c   : > { %s2664_s20 = smov %s2655_s29 }
 0x261   :  { %910 = vsyncpa [#allocation3], 1 }
 0x262   :  { %912 = vsyncpa [#allocation3 + $0x1], 1 }
 0x263   :  { %913 = vsyncpa [#allocation6], 1 }
 0x264   :  { %915 = vsyncpa [#allocation6 + $0x1], 1 }
 0x265   :  { %916 = vsyncpa [#allocation9], 1 }
 0x266   :  { %918 = vsyncpa [#allocation9 + $0x1], 1 }
 0x267   :  { %919 = vsyncpa [#allocation12], 1 }
 0x268   :  { %921 = vsyncpa [#allocation12 + $0x1], 1 }
 0x269   :  { %922 = vsyncpa [#allocation4], 1 }
 0x26a   :  { %924 = vsyncpa [#allocation4 + $0x1], 1 }
 0x26b   :  { %925 = vsyncpa [#allocation16], 1 }
 0x26c   :  { %927 = vsyncpa [#allocation16 + $0x1], 1 }

</bundles_post_ra>
